<compile_context>
chip_gen: v7x
topology: tpu7x:2x2x1
jax: 0.10.0
libtpu: 0.0.40
codegen_flags: <defaults>
</compile_context>

<pallas_src>
import math

import jax
import jax.numpy as jnp
from jax.experimental import pallas as pl
from jax.experimental.pallas import tpu as pltpu

LANE = 128
SUBLANE = 8


def _cdiv(a, b):
    return -(-a // b)


def _vmem_budget_bytes():
    """Per-generation VMEM budget for tiles (leaves headroom for Mosaic internal scratch)."""
    cap = 64 << 20  # conservative default: v7x per-TensorCore physical VMEM
    try:
        info = pltpu.get_tpu_info()
        cap = int(getattr(info, "vmem_capacity_bytes", cap))
    except Exception:
        pass
    # ~45 MiB on 64 MiB parts (v7x), ~90 MiB on 128 MiB parts (v5e/v6e).
    return min(int(cap * 0.70), 96 << 20)


def _choose_row_tile(n_rows, c, max_rows=128):
    """Row tile R with R % c == 0 and (R % 8 == 0 or R == n_rows). Returns (R, padded_rows)."""
    lcm_c8 = (c * 8) // math.gcd(c, 8)
    cap = min(n_rows, max(max_rows, lcm_c8))
    best = 0
    r = lcm_c8
    while r <= cap:
        if n_rows % r == 0:
            best = r
        r += lcm_c8
    if best:
        return best, n_rows
    if n_rows <= 4 * max_rows:
        return n_rows, n_rows  # one full-extent row block ((8,128) rule waived for full dims)
    # TODO(synk): rare fallback (n_rows has no 8-aligned divisor) costs one HBM pad copy.
    tile = max(max_rows // lcm_c8, 1) * lcm_c8
    return tile, _cdiv(n_rows, tile) * tile


def _affine_mix_kernel(w_ref, b_ref, x_ref, o_ref):
    # w_ref: (R, R)  VMEM, resident — block-diagonal kron(I_{R/c}, W_eff)
    # b_ref: (R, 1)  VMEM, resident — replicated effective bias
    # x_ref: (R, TL) VMEM input tile of the natural (b*t*c, h*w) view
    # o_ref: (R, TL) VMEM output tile
    y = jnp.dot(w_ref[...], x_ref[...], preferred_element_type=jnp.float32)
    o_ref[...] = (y + b_ref[...]).astype(o_ref.dtype)


def rev_residual_sequential(x, weights, biases, s_param):
    """Fused forward of RevResidualSequential with ChannelWise Conv1d(k=1) layers.

    x:        (b, t, c, h, w)
    weights:  (num_layers, c, c)
    biases:   (num_layers, c)
    s_param:  (1,) raw gate parameter (sigmoid applied inside the fold)
    """
    b, t, c, h, w = x.shape
    nl, cout, cin = weights.shape
    assert cout == c and cin == c and biases.shape == (nl, c)

    f32 = jnp.float32
    hp = jax.lax.Precision.HIGHEST

    # ---- Fold the reversible stack + gate into one affine map (tiny c x c host ops) ----
    # Start: x1 = x2 = x  (cat([x, x]) -> chunk(2)).  Per layer: (x1, x2) -> (x2, x1 + W_i x2 + b_i).
    # Track x1 = A1 x + c1, x2 = A2 x + c2;  out = g x1 + (1-g) x2 = W_eff x + b_eff.
    A1 = jnp.eye(c, dtype=f32)
    A2 = jnp.eye(c, dtype=f32)
    c1 = jnp.zeros((c,), f32)
    c2 = jnp.zeros((c,), f32)
    for i in range(nl):
        Wi = weights[i].astype(f32)
        bi = biases[i].astype(f32)
        A1, A2 = A2, A1 + jnp.dot(Wi, A2, precision=hp)
        c1, c2 = c2, c1 + jnp.dot(Wi, c2, precision=hp) + bi
    gate = jax.nn.sigmoid(jnp.asarray(s_param, f32).reshape(()))
    W_eff = gate * A1 + (1.0 - gate) * A2
    b_eff = gate * c1 + (1.0 - gate) * c2

    # ---- Natural contiguous 2D view: rows = (b*t*c), cols = (h*w); free reshape, no copies ----
    n_rows = b * t * c
    hw = h * w
    x2d = x.reshape(n_rows, hw)

    R, rows_pad = _choose_row_tile(n_rows, c)
    if rows_pad != n_rows:
        x2d = jnp.pad(x2d, ((0, rows_pad - n_rows), (0, 0)))
    n_row_tiles = rows_pad // R

    # ---- Block-diagonal weight packing: full sublane occupancy, one MXU matmul per tile ----
    reps = R // c
    w_blk = jnp.kron(jnp.eye(reps, dtype=f32), W_eff)   # (R, R)
    b_blk = jnp.tile(b_eff, reps).reshape(R, 1)          # (R, 1)
    if x.dtype == jnp.bfloat16:
        w_blk = w_blk.astype(jnp.bfloat16)               # keep tile math narrow; f32 accumulate

    # ---- Column tiling against the per-generation VMEM budget ----
    budget = _vmem_budget_bytes()
    item = x.dtype.itemsize
    r_pad = _cdiv(R, SUBLANE) * SUBLANE
    n_f32_tmp = 1 if x.dtype == jnp.float32 else 2        # dot result (+ promoted input copy)
    # 2x double-buffered input + 2x double-buffered output (input dtype) + f32 temps (+1 slack)
    bytes_per_lane = r_pad * (4 * item + (n_f32_tmp + 1) * 4)
    tile_budget = max(budget - (4 << 20), 1 << 20)         # weights / bias / misc reserve
    tl_cap = max(LANE, (tile_budget // bytes_per_lane // LANE) * LANE)
    if hw % LANE == 0:
        tl = min(hw, tl_cap)
    else:
        # TODO(synk): hw not a multiple of 128 -> single full-width column block.
        tl = hw
    n_col_tiles = _cdiv(hw, tl)

    # v7x has 2 TensorCores: only force >= 2 parallel grid steps when there is enough data
    # that splitting does not shrink tiles below the overhead-amortizing size.
    if (n_row_tiles * n_col_tiles == 1 and x2d.size * item >= (8 << 20)
            and hw % LANE == 0 and hw >= 2 * LANE):
        tl = max(LANE, _cdiv(hw, 2 * LANE) * LANE)
        n_col_tiles = _cdiv(hw, tl)

    grid = (n_row_tiles, n_col_tiles)

    out2d = pl.pallas_call(
        _affine_mix_kernel,
        out_shape=jax.ShapeDtypeStruct((rows_pad, hw), x.dtype),
        grid_spec=pltpu.PrefetchScalarGridSpec(
            num_scalar_prefetch=0,
            grid=grid,
            in_specs=[
                pl.BlockSpec((R, R), lambda i, j: (0, 0)),   # block-diag weights, resident
                pl.BlockSpec((R, 1), lambda i, j: (0, 0)),   # bias, resident
                pl.BlockSpec((R, tl), lambda i, j: (i, j)),  # input tile
            ],
            out_specs=pl.BlockSpec((R, tl), lambda i, j: (i, j)),
        ),
        compiler_params=pltpu.CompilerParams(
            dimension_semantics=("parallel", "parallel"),
            vmem_limit_bytes=int(budget),
        ),
    )(w_blk, b_blk, x2d)

    if rows_pad != n_rows:
        out2d = out2d[:n_rows]
    return out2d.reshape(b, t, c, h, w)


if __name__ == "__main__":
    # Small shapes consistent with the video module: batch=2, time=3, channels=4, 16x16 spatial.
    B, T, C, H, W = 2, 3, 4, 16, 16
    NUM_LAYERS = 2  # one classic reversible pair: F then G

    key = jax.random.PRNGKey(0)
    kx, kw, kb, ks = jax.random.split(key, 4)

    x = jax.random.normal(kx, (B, T, C, H, W), dtype=jnp.float32)

    # Conv1d(C, C, kernel_size=1) parameters, PyTorch-style uniform init bound 1/sqrt(C).
    bound = 1.0 / (C ** 0.5)
    weights = jax.random.uniform(kw, (NUM_LAYERS, C, C), jnp.float32, -bound, bound)
    biases = jax.random.uniform(kb, (NUM_LAYERS, C), jnp.float32, -bound, bound)
    # nn.Parameter(torch.zeros(1)) initializes the gate at 0 (sigmoid -> 0.5); use a non-zero
    # value here so the gating path is actually exercised.
    s_param = jax.random.normal(ks, (1,), jnp.float32) * 0.5

    out = jax.block_until_ready(rev_residual_sequential(x, weights, biases, s_param))

    # Pure-JAX reference: explicit reversible coupling + gate (no folding).
    x1 = x
    x2 = x
    for i in range(NUM_LAYERS):
        f = jnp.einsum("oc,btchw->btohw", weights[i], x2,
                       precision=jax.lax.Precision.HIGHEST)
        f = f + biases[i][None, None, :, None, None]
        x1, x2 = x2, x1 + f
    gate = jax.nn.sigmoid(s_param[0])
    ref = gate * x1 + (1.0 - gate) * x2

    assert out.shape == (B, T, C, H, W)
    max_err = float(jnp.max(jnp.abs(out - ref)))
    assert jnp.allclose(out, ref, atol=5e-5, rtol=5e-5), f"max abs err = {max_err}"
    print("KERNEL_OK")
</pallas_src>

<mosaic_0001>
module attributes {stable_mosaic.version = 11 : i64} {
  func.func @_affine_mix_kernel(%arg0: i32, %arg1: i32, %arg2: memref<24x24xf32, #tpu.memory_space<vmem>>, %arg3: memref<24x1xf32, #tpu.memory_space<vmem>>, %arg4: memref<24x256xf32, #tpu.memory_space<vmem>>, %arg5: memref<24x256xf32, #tpu.memory_space<vmem>>) attributes {dimension_semantics = [#tpu.dimension_semantics<parallel>, #tpu.dimension_semantics<parallel>], iteration_bounds = array<i64: 1, 1>, scalar_prefetch = 0 : i64, scratch_operands = 0 : i64, tpu.core_type = #tpu.core_type<tc>, window_params = [{pipeline_mode = #tpu.pipeline_mode<synchronous>, transform_indices = @transform_0, window_bounds = array<i64: 24, 24>}, {pipeline_mode = #tpu.pipeline_mode<synchronous>, transform_indices = @transform_1, window_bounds = array<i64: 24, 1>}, {transform_indices = @transform_2, window_bounds = array<i64: 24, 256>}, {transform_indices = @transform_3, window_bounds = array<i64: 24, 256>}]} {
    %c0 = arith.constant 0 : index
    %c0_0 = arith.constant 0 : index
    %0 = vector.load %arg2[%c0, %c0_0] : memref<24x24xf32, #tpu.memory_space<vmem>>, vector<24x24xf32>
    %c0_1 = arith.constant 0 : index
    %c0_2 = arith.constant 0 : index
    %1 = vector.load %arg4[%c0_1, %c0_2] : memref<24x256xf32, #tpu.memory_space<vmem>>, vector<24x256xf32>
    %cst = arith.constant dense<0.000000e+00> : vector<24x256xf32>
    %2 = tpu.matmul %0, %1, %cst {dimension_numbers = #tpu.dot_dimension_numbers<[1], [0], [0], [1], [0, 0, 1, 1], [], []>} : vector<24x24xf32>, vector<24x256xf32>, vector<24x256xf32> -> vector<24x256xf32>
    %c0_3 = arith.constant 0 : index
    %c0_4 = arith.constant 0 : index
    %3 = vector.load %arg3[%c0_3, %c0_4] : memref<24x1xf32, #tpu.memory_space<vmem>>, vector<24x1xf32>
    %4 = vector.broadcast %3 : vector<24x1xf32> to vector<24x256xf32>
    %5 = arith.addf %2, %4 : vector<24x256xf32>
    %c0_5 = arith.constant 0 : index
    %c0_6 = arith.constant 0 : index
    %6 = vector.load %arg5[%c0_5, %c0_6] : memref<24x256xf32, #tpu.memory_space<vmem>>, vector<24x256xf32>
    tpu.vector_store %arg5[%c0_5, %c0_6], %5 {strides = array<i32>} : memref<24x256xf32, #tpu.memory_space<vmem>>, vector<24x256xf32>,
    return
  }
  func.func @transform_0(%arg0: i32, %arg1: i32) -> (i32, i32) {
    %c0_i32 = arith.constant 0 : i32
    %c0_i32_0 = arith.constant 0 : i32
    %c0_i32_1 = arith.constant 0 : i32
    return %c0_i32, %c0_i32_0 : i32, i32
  }
  func.func @transform_1(%arg0: i32, %arg1: i32) -> (i32, i32) {
    %c0_i32 = arith.constant 0 : i32
    %c0_i32_0 = arith.constant 0 : i32
    %c0_i32_1 = arith.constant 0 : i32
    return %c0_i32, %c0_i32_0 : i32, i32
  }
  func.func @transform_2(%arg0: i32, %arg1: i32) -> (i32, i32) {
    %c0_i32 = arith.constant 0 : i32
    return %arg0, %arg1 : i32, i32
  }
  func.func @transform_3(%arg0: i32, %arg1: i32) -> (i32, i32) {
    %c0_i32 = arith.constant 0 : i32
    return %arg0, %arg1 : i32, i32
  }
}

</mosaic_0001>

<bundles_post_ra>
// kernel: tpu_custom_call.1
= control target key start
LH: loop header
LB: loop body
LE: loop exit
PB: predicated region body
PF: predicated region fallthrough
CT: control target
= control target key end

     0   :  { %8 = vsyncpa [#allocation3], 0  ;;  %s313_s0 = inlined_call_operand.vmem [shape: f32[24,24], index: 0, kind: input, shape index: {}]   ;;  %s314_s1 = inlined_call_operand.vmem [shape: f32[24,1], index: 1, kind: input, shape index: {}]   ;;  %s315_s2 = inlined_call_operand.hbm [shape: f32[24,256], index: 2, kind: input, shape index: {}]   ;;  %s316_s3 = inlined_call_operand.hbm [shape: f32[24,256], index: 3, kind: output, shape index: {}]  }
   0x1   :  { %9 = vsyncpa [#allocation4], 0  ;;  %s239_s12 = smov [#allocation2]   ;;  %s191_s16 = scalar_lea.hbm %s315_s2, 768 }
   0x2   :  { %s19_s13 = sshll.u32 %s239_s12, 4  ;;  %p192_p0 = scmp.ne.s32.totalorder %s315_s2, %s191_s16  ;;  %s20_s13 = int_to_ptr.vmem [resolvable:$true] %s19_s13 }
   0x3   :  { %p195_p1 = scmp.lt.u32.totalorder %s191_s16, %s315_s2 }
   0x5   :  { %p197_p2 = pnand %p195_p1, %p192_p0 }
   0x7   :  { %200 = shalt.err (!%p197_p2)
}
   0x8   :  { %s201_s21 = scalar_lea.vmem %s20_s13, 768  ;;  %p206_p4 = scmp.lt.s32.totalorder %s20_s13, %s20_s13 }
   0x9   :  { %p202_p3 = scmp.ne.s32.totalorder %s20_s13, %s201_s21  ;;  %p207_p5 = scmp.lt.s32.totalorder %s201_s21, %s201_s21 }
   0xb   :  { %p208_p6 = por %p207_p5, %p206_p4 }
   0xd   :  { %p209_p7 = pnand %p208_p6, %p202_p3 }
   0xf   :  { %212 = shalt.err (!%p209_p7)
}
  0x10   :  { %s240_s22 = smov 256   ;;  %s241_s23 = smov 16  }
  0x11   :  { %25 = dma.hbm_to_vmem [thread:$0]  %s315_s2, 768, %s20_s13, [#allocation3], %s240_s22, %s240_s22, %s241_s23  }
  0x12   :  { %235 = dma.done.wait [#allocation3], 768  }
  0x13   :  { %236 = vsyncadd [#allocation3], 4294966528  ;;  %v242_v0 = vmov 0.0   ;;  %v243_v1 = vmov 0   ;;  %v33_v2 = vld [vmem:[#allocation2 + $0x8] sm:$0xff]  ;;  %v35_v3 = vld [vmem:[#allocation2 + $0x18] sm:$0xff] }
  0x14   :  { %130 = vmatprep.mubr.f32.mxu0 %v242_v0  ;;  %136 = vmatprep.mubr.f32.mxu1 %v242_v0  ;;  %v32_v4 = vld [vmem:[#allocation2] sm:$0xff]  ;;  %v175_v5 = vpack.c.bf16 %v35_v3, %v33_v2  ;;  %v34_v6 = vld [vmem:[#allocation2 + $0x10] sm:$0xff]  ;;  %v37_v8 = vld [vmem:[#allocation2 + $0x28] sm:$0xff]  ;;  %vm56_vm0 = vcmask 195584  }
  0x15   :  { %189 = vset.pattern.permute.xlu0 %v243_v1  ;;  %190 = vset.pattern.permute.xlu1 %v243_v1  ;;  %v177_v7 = vpack.c.bf16 %v34_v6, %v32_v4  ;;  %v38_v9 = vld [vmem:[%s314_s1] sm:$0xff]  ;;  %v40_v10 = vld [vmem:[%s314_s1 + $0x10] sm:$0xff]  ;;  %v30_v13 = vld [vmem:[%s313_s0 + $0x8] sm:$0xff] }
  0x16   :  { %176 = vmatprep.subr.bf16.mxu0 %v175_v5  ;;  %179 = vmatprep.subr.bf16.mxu1 %v175_v5  ;;  %v36_v11 = vld [vmem:[#allocation2 + $0x20] sm:$0xff]  ;;  %v39_v14 = vld [vmem:[%s314_s1 + $0x8] sm:$0xff]  ;;  %v31_v15 = vld [vmem:[%s313_s0 + $0x10] sm:$0xff]  ;;  %s244_s1 = smov [#allocation5]  }
  0x17   :  { %178 = vmatpush1.bf16.msra.mxu0 %v177_v7  ;;  %181 = vmatpush1.bf16.msra.mxu1 %v177_v7  ;;  %v29_v12 = vld [vmem:[%s313_s0] sm:$0xff]  ;;  %s160_s10 = sshll.u32 %s244_s1, 4  ;;  %s161_s10 = int_to_ptr.vmem [resolvable:$true] %s160_s10 }
  0x18   :  { %70 = vmatprep.subr.mxu0 %v37_v8  ;;  %180 = vmatprep.subr.mxu1 %v37_v8  ;;  %s213_s0 = scalar_lea.vmem %s161_s10, 768  ;;  %p218_p9 = scmp.lt.s32.totalorder %s161_s10, %s161_s10 }
  0x19   :  { %43 = vperm.xlu0 %189, %v38_v9   ;;  %53 = vperm.xlu1 %190, %v40_v10   ;;  %p214_p8 = scmp.ne.s32.totalorder %s161_s10, %s213_s0  ;;  %p219_p10 = scmp.lt.s32.totalorder %s213_s0, %s213_s0 }
  0x1b   :  { %71 = vmatpush1.msra.mxu0 %v36_v11  ;;  %182 = vmatpush1.msra.mxu1 %v36_v11  ;;  %p220_p11 = por %p219_p10, %p218_p9 }
  0x1c   :  { %172 = vmatmul.mubr.msk.f32.vlgmr.msra.gmra.mrb[0].mxu0 %vm56_vm0, %v29_v12  ;;  %173 = vmatmul.mubr.msk.f32.vlgmr.msra.gmra.mrb[0].mxu1 %vm56_vm0, %v30_v13 }
  0x1d   :  { %142 = vmatprep.mubr.f32.mxu1 %v242_v0  ;;  %48 = vperm.xlu0 %189, %v39_v14   ;;  %p221_p12 = pnand %p220_p11, %p214_p8 }
  0x20   :  { %174 = vmatmul.mubr.msk.f32.gmra.mrb[2].mxu1 %vm56_vm0, %v31_v15 }
  0x98   :  { %v44_v16 = vpop.permute.xlu0 %43  ;;  %v54_v26 = vpop.permute.xlu1 %53 }
  0x9c   :  { %v49_v17 = vpop.permute.xlu0 %48 }
  0xef   :  { %v132_v18 = vpop.f32.mrb[0].mxu0  ;;  %v138_v19 = vpop.f32.mrb[0].mxu1 }
  0xf0   :  { %v133_v20 = vadd.f32 %v132_v18, %v44_v16  ;;  %v139_v21 = vadd.f32 %v138_v19, %v49_v17  ;;  %v134_v22 = vpop.f32.mrb[1].mxu0  ;;  %v140_v23 = vpop.f32.mrb[1].mxu1 }
  0xf1   :  { %v135_v24 = vadd.f32 %v134_v22, %v44_v16  ;;  %v141_v25 = vadd.f32 %v140_v23, %v49_v17 }
  0xf2   :  { %149 = vst [vmem:[#allocation5] sm:$0xff] %v133_v20  ;;  %151 = vst [vmem:[#allocation5 + $0x10] sm:$0xff] %v139_v21 }
  0xf3   :  { %150 = vst [vmem:[#allocation5 + $0x8] sm:$0xff] %v135_v24  ;;  %152 = vst [vmem:[#allocation5 + $0x18] sm:$0xff] %v141_v25  ;;  %v144_v27 = vpop.f32.mrb[2].mxu1 }
  0xf4   :  { %v145_v28 = vadd.f32 %v144_v27, %v54_v26  ;;  %v146_v29 = vpop.f32.mrb[3].mxu1 }
  0xf5   :  { %v147_v30 = vadd.f32 %v146_v29, %v54_v26 }
  0xf6   :  { %153 = vst [vmem:[#allocation5 + $0x20] sm:$0xff] %v145_v28 }
  0xf7   :  { %154 = vst [vmem:[#allocation5 + $0x28] sm:$0xff] %v147_v30 }
  0xf8   :  { %224 = shalt.err (!%p221_p12)
}
  0xf9   :  { %s225_s13 = scalar_lea.hbm %s316_s3, 768 }
  0xfa   :  { %p226_p13 = scmp.ne.s32.totalorder %s316_s3, %s225_s13  ;;  %p229_p0 = scmp.lt.u32.totalorder %s225_s13, %s316_s3 }
  0xfc   :  { %p231_p1 = pnand %p229_p0, %p226_p13 }
  0xfe   :  { %234 = shalt.err (!%p231_p1)
}
  0xff   :  { %166 = dma.vmem_to_hbm [thread:$0]  %s161_s10, 768, %s316_s3, [#allocation4], %s240_s22, %s240_s22, %s241_s23  }
 0x100   :  { %237 = dma.done.wait [#allocation4], 768  }
 0x101   :  { %238 = vsyncadd [#allocation4], 4294966528 }
 0x102   :  { %170 = vsyncpa [#allocation3], 1 }
 0x103   :  { %171 = vsyncpa [#allocation4], 1 }

</bundles_post_ra>
